<compile_context>
chip_gen: v7x
topology: tpu7x:2x2x1
jax: 0.10.0
libtpu: 0.0.40
codegen_flags: <defaults>
</compile_context>

<pallas_src>
import jax
import jax.numpy as jnp
import numpy as np
from jax.experimental import pallas as pl
from jax.experimental.pallas import tpu as pltpu

_EPS = 1e-5
_LANE = 128
_VMEM_LIMIT = 32 << 20  # explicit scoped-VMEM budget (safe on v5e/v6e/v7x)


def _round_up(x, m):
    return (x + m - 1) // m * m


def _pick_tile_m():
    """Generation-aware M tile: larger on 128-MiB-VMEM parts (v5e/v6e), smaller on v7x."""
    try:
        info = pltpu.get_tpu_info()
        vmem = getattr(info, "vmem_capacity_bytes", 64 << 20)
    except Exception:  # interpret mode / older runtimes
        vmem = 64 << 20
    return 2048 if vmem >= (100 << 20) else 1024


# ---------------------------------------------------------------------------
# Phase A: tiled conv-as-matmul (bf16 MXU, f32 acc) + per-channel sum / sumsq.
# The (1, Cpad) stat outputs keep the same block index for every grid step, so
# they stay resident in VMEM and accumulate across the whole M reduction axis.
# ---------------------------------------------------------------------------
def _conv_stats_kernel(p_ref, w_ref, y_ref, s_ref, ss_ref):
    @pl.when(pl.program_id(0) == 0)
    def _():
        s_ref[...] = jnp.zeros_like(s_ref)
        ss_ref[...] = jnp.zeros_like(ss_ref)

    y = jnp.dot(p_ref[...], w_ref[...], preferred_element_type=jnp.float32)
    y_ref[...] = y
    s_ref[...] += jnp.sum(y, axis=0, keepdims=True)
    ss_ref[...] += jnp.sum(y * y, axis=0, keepdims=True)


def _conv_stats_call(patches_bf16, w_bf16, tile_m):
    mp, kp = patches_bf16.shape
    cp = w_bf16.shape[1]
    nt = mp // tile_m
    return pl.pallas_call(
        _conv_stats_kernel,
        out_shape=(
            jax.ShapeDtypeStruct((mp, cp), jnp.float32),   # pre-BN conv output
            jax.ShapeDtypeStruct((1, cp), jnp.float32),    # per-channel sum
            jax.ShapeDtypeStruct((1, cp), jnp.float32),    # per-channel sum of squares
        ),
        grid=(nt,),
        in_specs=[
            pl.BlockSpec((tile_m, kp), lambda i: (i, 0)),
            pl.BlockSpec((kp, cp), lambda i: (0, 0)),
        ],
        out_specs=(
            pl.BlockSpec((tile_m, cp), lambda i: (i, 0)),
            pl.BlockSpec((1, cp), lambda i: (0, 0)),
            pl.BlockSpec((1, cp), lambda i: (0, 0)),
        ),
        compiler_params=pltpu.CompilerParams(
            dimension_semantics=("arbitrary",),            # stats reduce over M
            vmem_limit_bytes=_VMEM_LIMIT,
        ),
    )(patches_bf16, w_bf16)


# ---------------------------------------------------------------------------
# Phase B: BN (folded to scale/shift) + ReLU, tiled and megacore-parallel.
# ---------------------------------------------------------------------------
def _bn_relu_kernel(y_ref, sc_ref, sh_ref, o_ref):
    o_ref[...] = jnp.maximum(y_ref[...] * sc_ref[...] + sh_ref[...], 0.0)


def _bn_relu_call(y, scale, shift, tile_m):
    mp, cp = y.shape
    nt = mp // tile_m
    return pl.pallas_call(
        _bn_relu_kernel,
        out_shape=jax.ShapeDtypeStruct((mp, cp), jnp.float32),
        grid=(nt,),
        in_specs=[
            pl.BlockSpec((tile_m, cp), lambda i: (i, 0)),
            pl.BlockSpec((1, cp), lambda i: (0, 0)),
            pl.BlockSpec((1, cp), lambda i: (0, 0)),
        ],
        out_specs=pl.BlockSpec((tile_m, cp), lambda i: (i, 0)),
        compiler_params=pltpu.CompilerParams(
            dimension_semantics=("parallel",),
            vmem_limit_bytes=_VMEM_LIMIT,
        ),
    )(y, scale, shift)


# ---------------------------------------------------------------------------
# Glue: im2col patch extraction (pure reshuffle, no compute).
# TODO(synk): fuse patch construction into the kernel (halo-tiled NHWC BlockSpec,
# conv as KH*KW shifted matmuls) to avoid the KH*KW x HBM expansion and the
# stage-1 -> stage-2 HBM round trip.
# ---------------------------------------------------------------------------
def _im2col(x_nhwc, kh, kw, stride, padding):
    B, H, W, C = x_nhwc.shape
    xp = jnp.pad(x_nhwc, ((0, 0), (padding, padding), (padding, padding), (0, 0)))
    Ho = (H + 2 * padding - kh) // stride + 1
    Wo = (W + 2 * padding - kw) // stride + 1
    cols = []
    for i in range(kh):
        for j in range(kw):
            cols.append(
                xp[:, i:i + (Ho - 1) * stride + 1:stride,
                      j:j + (Wo - 1) * stride + 1:stride, :]
            )
    p = jnp.stack(cols, axis=3)                       # (B, Ho, Wo, KH*KW, C)
    return p.reshape(B * Ho * Wo, kh * kw * C), Ho, Wo


def _conv_bn_relu_stage(x_nhwc, w_oihw, gamma, beta, kh, kw, stride, padding, tile_m_pref):
    """conv(no bias) -> BatchNorm(batch stats) -> ReLU for one stage."""
    B = x_nhwc.shape[0]
    c_out = w_oihw.shape[0]

    patches, ho, wo = _im2col(x_nhwc, kh, kw, stride, padding)
    M, K = patches.shape
    kp = _round_up(K, 8)
    cp = _round_up(c_out, _LANE)                      # lane-dense output axis
    tile_m = min(tile_m_pref, _round_up(M, 8))
    mp = _round_up(M, tile_m)

    # bf16 MXU operands (f32 accumulation in-kernel); zero-pad M, K, C.
    patches_p = jnp.pad(patches.astype(jnp.bfloat16), ((0, mp - M), (0, kp - K)))
    wmat = jnp.transpose(w_oihw, (2, 3, 1, 0)).reshape(K, c_out)
    w_p = jnp.pad(wmat.astype(jnp.bfloat16), ((0, kp - K), (0, cp - c_out)))

    y, s, ss = _conv_stats_call(patches_p, w_p, tile_m)

    # Fold BN into one scale/shift per channel (tiny (1, Cpad) math).
    # Padded rows/channels are exact zeros so they don't pollute the sums;
    # divide by the true M. Conv bias omitted: cancelled by mean subtraction.
    inv_m = 1.0 / float(M)
    mean = s * inv_m
    var = jnp.maximum(ss * inv_m - mean * mean, 0.0)  # biased variance
    g = jnp.pad(gamma.astype(jnp.float32), (0, cp - c_out)).reshape(1, cp)
    b = jnp.pad(beta.astype(jnp.float32), (0, cp - c_out)).reshape(1, cp)
    scale = g * jax.lax.rsqrt(var + _EPS)
    shift = b - mean * scale

    out = _bn_relu_call(y, scale, shift, tile_m)
    return out[:M, :c_out].reshape(B, ho, wo, c_out)


# ---------------------------------------------------------------------------
# Module equivalent.
# ---------------------------------------------------------------------------
class UNetDownBlockPallas:
    def __init__(self, in_channels, out_channels, kernel_size, stride, padding, key):
        self.in_channels = in_channels
        self.out_channels = out_channels
        self.kernel_size = kernel_size
        self.stride = stride
        self.padding = padding  # stored but unused, mirroring the PyTorch module

        ks = jax.random.split(key, 8)
        fan1 = in_channels * kernel_size * kernel_size
        self.w1 = jax.random.normal(
            ks[0], (out_channels, in_channels, kernel_size, kernel_size), jnp.float32
        ) / np.sqrt(fan1)
        self.b1 = 0.05 * jax.random.normal(ks[1], (out_channels,), jnp.float32)
        self.g1 = 1.0 + 0.1 * jax.random.normal(ks[2], (out_channels,), jnp.float32)
        self.beta1 = 0.1 * jax.random.normal(ks[3], (out_channels,), jnp.float32)

        fan2 = out_channels * 3 * 3
        self.w2 = jax.random.normal(
            ks[4], (out_channels, out_channels, 3, 3), jnp.float32
        ) / np.sqrt(fan2)
        self.b2 = 0.05 * jax.random.normal(ks[5], (out_channels,), jnp.float32)
        self.g2 = 1.0 + 0.1 * jax.random.normal(ks[6], (out_channels,), jnp.float32)
        self.beta2 = 0.1 * jax.random.normal(ks[7], (out_channels,), jnp.float32)

    def __call__(self, x_nchw):
        x = jnp.transpose(x_nchw, (0, 2, 3, 1)).astype(jnp.float32)  # NCHW -> NHWC
        tile_m = _pick_tile_m()

        # stage 1: conv1(kernel_size, stride, pad=1) -> bn1 -> relu1
        y1 = _conv_bn_relu_stage(x, self.w1, self.g1, self.beta1,
                                 self.kernel_size, self.kernel_size, self.stride, 1,
                                 tile_m)
        # stage 2: conv2(3x3, stride 1, pad=1) -> bn2 -> relu2
        y2 = _conv_bn_relu_stage(y1, self.w2, self.g2, self.beta2, 3, 3, 1, 1, tile_m)

        return jnp.transpose(y2, (0, 3, 1, 2))  # NHWC -> NCHW


# ---------------------------------------------------------------------------
# Pure-JAX f32 reference (XLA conv, with conv bias) for correctness checking.
# ---------------------------------------------------------------------------
def _reference(block, x):
    def conv(x, w, b, stride, padding):
        y = jax.lax.conv_general_dilated(
            x, w, (stride, stride), [(padding, padding)] * 2,
            dimension_numbers=("NCHW", "OIHW", "NCHW"))
        return y + b[None, :, None, None]

    def bn_relu(y, g, bt):
        mean = jnp.mean(y, axis=(0, 2, 3), keepdims=True)
        var = jnp.mean(jnp.square(y - mean), axis=(0, 2, 3), keepdims=True)
        y = (y - mean) * jax.lax.rsqrt(var + _EPS) \
            * g[None, :, None, None] + bt[None, :, None, None]
        return jnp.maximum(y, 0.0)

    y = bn_relu(conv(x, block.w1, block.b1, block.stride, 1), block.g1, block.beta1)
    y = bn_relu(conv(y, block.w2, block.b2, 1, 1), block.g2, block.beta2)
    return y


if __name__ == "__main__":
    key = jax.random.PRNGKey(0)
    k_param, k_x = jax.random.split(key)

    in_channels, out_channels = 4, 8
    kernel_size, stride, padding = 3, 2, 1
    block = UNetDownBlockPallas(in_channels, out_channels, kernel_size, stride,
                                padding, k_param)

    x = jax.random.normal(k_x, (2, in_channels, 16, 16), jnp.float32)

    out = jax.jit(block.__call__)(x)
    out = jax.block_until_ready(out)

    # sanity checks: shape, finiteness, agreement with the f32 XLA reference
    assert out.shape == (2, out_channels, 8, 8), out.shape
    assert bool(jnp.all(jnp.isfinite(out)))
    ref = jax.block_until_ready(_reference(block, x))
    # tightened tolerance (bf16 MXU operands, f32 accumulation/BN math)
    max_err = float(jnp.max(jnp.abs(out - ref)))
    assert max_err < 2.5e-2, max_err

    print("KERNEL_OK")
</pallas_src>

<mosaic_0001>
module attributes {stable_mosaic.version = 11 : i64} {
  func.func @_conv_stats_kernel(%arg0: i32, %arg1: memref<128x40xbf16, #tpu.memory_space<vmem>>, %arg2: memref<40x128xbf16, #tpu.memory_space<vmem>>, %arg3: memref<128x128xf32, #tpu.memory_space<vmem>>, %arg4: memref<1x128xf32, #tpu.memory_space<vmem>>, %arg5: memref<1x128xf32, #tpu.memory_space<vmem>>) attributes {dimension_semantics = [#tpu.dimension_semantics<arbitrary>], iteration_bounds = array<i64: 1>, scalar_prefetch = 0 : i64, scratch_operands = 0 : i64, tpu.core_type = #tpu.core_type<tc>, window_params = [{transform_indices = @transform_0, window_bounds = array<i64: 128, 40>}, {pipeline_mode = #tpu.pipeline_mode<synchronous>, transform_indices = @transform_1, window_bounds = array<i64: 40, 128>}, {transform_indices = @transform_2, window_bounds = array<i64: 128, 128>}, {pipeline_mode = #tpu.pipeline_mode<synchronous>, transform_indices = @transform_3, window_bounds = array<i64: 1, 128>}, {pipeline_mode = #tpu.pipeline_mode<synchronous>, transform_indices = @transform_4, window_bounds = array<i64: 1, 128>}]} {
    %c0_i32 = arith.constant 0 : i32
    %0 = arith.cmpi eq, %arg0, %c0_i32 : i32
    %1 = arith.extui %0 : i1 to i32
    %c0_i32_0 = arith.constant 0 : i32
    %2 = arith.cmpi ne, %1, %c0_i32_0 : i32
    scf.if %2 {
      %cst_16 = arith.constant 0.000000e+00 : f32
      %18 = vector.broadcast %cst_16 : f32 to vector<1x128xf32>
      %c0_17 = arith.constant 0 : index
      %c0_18 = arith.constant 0 : index
      %19 = vector.load %arg4[%c0_17, %c0_18] : memref<1x128xf32, #tpu.memory_space<vmem>>, vector<1x128xf32>
      tpu.vector_store %arg4[%c0_17, %c0_18], %18 {strides = array<i32>} : memref<1x128xf32, #tpu.memory_space<vmem>>, vector<1x128xf32>,
      %cst_19 = arith.constant 0.000000e+00 : f32
      %20 = vector.broadcast %cst_19 : f32 to vector<1x128xf32>
      %c0_20 = arith.constant 0 : index
      %c0_21 = arith.constant 0 : index
      %21 = vector.load %arg5[%c0_20, %c0_21] : memref<1x128xf32, #tpu.memory_space<vmem>>, vector<1x128xf32>
      tpu.vector_store %arg5[%c0_20, %c0_21], %20 {strides = array<i32>} : memref<1x128xf32, #tpu.memory_space<vmem>>, vector<1x128xf32>,
    } else {
    }
    %c0 = arith.constant 0 : index
    %c0_1 = arith.constant 0 : index
    %3 = vector.load %arg1[%c0, %c0_1] : memref<128x40xbf16, #tpu.memory_space<vmem>>, vector<128x40xbf16>
    %c0_2 = arith.constant 0 : index
    %c0_3 = arith.constant 0 : index
    %4 = vector.load %arg2[%c0_2, %c0_3] : memref<40x128xbf16, #tpu.memory_space<vmem>>, vector<40x128xbf16>
    %cst = arith.constant dense<0.000000e+00> : vector<128x128xf32>
    %5 = tpu.matmul %3, %4, %cst {dimension_numbers = #tpu.dot_dimension_numbers<[1], [0], [0], [1], [0, 0, 1, 1], [], []>} : vector<128x40xbf16>, vector<40x128xbf16>, vector<128x128xf32> -> vector<128x128xf32>
    %c0_4 = arith.constant 0 : index
    %c0_5 = arith.constant 0 : index
    %6 = vector.load %arg3[%c0_4, %c0_5] : memref<128x128xf32, #tpu.memory_space<vmem>>, vector<128x128xf32>
    tpu.vector_store %arg3[%c0_4, %c0_5], %5 {strides = array<i32>} : memref<128x128xf32, #tpu.memory_space<vmem>>, vector<128x128xf32>,
    %c0_6 = arith.constant 0 : index
    %c0_7 = arith.constant 0 : index
    %7 = vector.load %arg4[%c0_6, %c0_7] : memref<1x128xf32, #tpu.memory_space<vmem>>, vector<1x128xf32>
    %cst_8 = arith.constant dense<0.000000e+00> : vector<128xf32>
    %8 = vector.multi_reduction <add>, %5, %cst_8 [0] : vector<128x128xf32> to vector<128xf32>
    %9 = vector.shape_cast %8 : vector<128xf32> to vector<1x128xf32>
    %10 = arith.addf %7, %9 : vector<1x128xf32>
    %c0_9 = arith.constant 0 : index
    %c0_10 = arith.constant 0 : index
    %11 = vector.load %arg4[%c0_9, %c0_10] : memref<1x128xf32, #tpu.memory_space<vmem>>, vector<1x128xf32>
    tpu.vector_store %arg4[%c0_9, %c0_10], %10 {strides = array<i32>} : memref<1x128xf32, #tpu.memory_space<vmem>>, vector<1x128xf32>,
    %c0_11 = arith.constant 0 : index
    %c0_12 = arith.constant 0 : index
    %12 = vector.load %arg5[%c0_11, %c0_12] : memref<1x128xf32, #tpu.memory_space<vmem>>, vector<1x128xf32>
    %13 = arith.mulf %5, %5 : vector<128x128xf32>
    %cst_13 = arith.constant dense<0.000000e+00> : vector<128xf32>
    %14 = vector.multi_reduction <add>, %13, %cst_13 [0] : vector<128x128xf32> to vector<128xf32>
    %15 = vector.shape_cast %14 : vector<128xf32> to vector<1x128xf32>
    %16 = arith.addf %12, %15 : vector<1x128xf32>
    %c0_14 = arith.constant 0 : index
    %c0_15 = arith.constant 0 : index
    %17 = vector.load %arg5[%c0_14, %c0_15] : memref<1x128xf32, #tpu.memory_space<vmem>>, vector<1x128xf32>
    tpu.vector_store %arg5[%c0_14, %c0_15], %16 {strides = array<i32>} : memref<1x128xf32, #tpu.memory_space<vmem>>, vector<1x128xf32>,
    return
  }
  func.func @transform_0(%arg0: i32) -> (i32, i32) {
    %c0_i32 = arith.constant 0 : i32
    %c0_i32_0 = arith.constant 0 : i32
    return %arg0, %c0_i32 : i32, i32
  }
  func.func @transform_1(%arg0: i32) -> (i32, i32) {
    %c0_i32 = arith.constant 0 : i32
    %c0_i32_0 = arith.constant 0 : i32
    %c0_i32_1 = arith.constant 0 : i32
    return %c0_i32, %c0_i32_0 : i32, i32
  }
  func.func @transform_2(%arg0: i32) -> (i32, i32) {
    %c0_i32 = arith.constant 0 : i32
    %c0_i32_0 = arith.constant 0 : i32
    return %arg0, %c0_i32 : i32, i32
  }
  func.func @transform_3(%arg0: i32) -> (i32, i32) {
    %c0_i32 = arith.constant 0 : i32
    %c0_i32_0 = arith.constant 0 : i32
    %c0_i32_1 = arith.constant 0 : i32
    return %c0_i32, %c0_i32_0 : i32, i32
  }
  func.func @transform_4(%arg0: i32) -> (i32, i32) {
    %c0_i32 = arith.constant 0 : i32
    %c0_i32_0 = arith.constant 0 : i32
    %c0_i32_1 = arith.constant 0 : i32
    return %c0_i32, %c0_i32_0 : i32, i32
  }
}

module attributes {stable_mosaic.version = 11 : i64} {
  func.func @_bn_relu_kernel(%arg0: i32, %arg1: memref<128x128xf32, #tpu.memory_space<vmem>>, %arg2: memref<1x128xf32, #tpu.memory_space<vmem>>, %arg3: memref<1x128xf32, #tpu.memory_space<vmem>>, %arg4: memref<128x128xf32, #tpu.memory_space<vmem>>) attributes {dimension_semantics = [#tpu.dimension_semantics<parallel>], iteration_bounds = array<i64: 1>, scalar_prefetch = 0 : i64, scratch_operands = 0 : i64, tpu.core_type = #tpu.core_type<tc>, window_params = [{transform_indices = @transform_0, window_bounds = array<i64: 128, 128>}, {pipeline_mode = #tpu.pipeline_mode<synchronous>, transform_indices = @transform_1, window_bounds = array<i64: 1, 128>}, {pipeline_mode = #tpu.pipeline_mode<synchronous>, transform_indices = @transform_2, window_bounds = array<i64: 1, 128>}, {transform_indices = @transform_3, window_bounds = array<i64: 128, 128>}]} {
    %c0 = arith.constant 0 : index
    %c0_0 = arith.constant 0 : index
    %0 = vector.load %arg1[%c0, %c0_0] : memref<128x128xf32, #tpu.memory_space<vmem>>, vector<128x128xf32>
    %c0_1 = arith.constant 0 : index
    %c0_2 = arith.constant 0 : index
    %1 = vector.load %arg2[%c0_1, %c0_2] : memref<1x128xf32, #tpu.memory_space<vmem>>, vector<1x128xf32>
    %2 = vector.broadcast %1 : vector<1x128xf32> to vector<128x128xf32>
    %3 = arith.mulf %0, %2 : vector<128x128xf32>
    %c0_3 = arith.constant 0 : index
    %c0_4 = arith.constant 0 : index
    %4 = vector.load %arg3[%c0_3, %c0_4] : memref<1x128xf32, #tpu.memory_space<vmem>>, vector<1x128xf32>
    %5 = vector.broadcast %4 : vector<1x128xf32> to vector<128x128xf32>
    %6 = arith.addf %3, %5 : vector<128x128xf32>
    %cst = arith.constant 0.000000e+00 : f32
    %7 = vector.broadcast %cst : f32 to vector<128x128xf32>
    %8 = arith.maximumf %6, %7 : vector<128x128xf32>
    %c0_5 = arith.constant 0 : index
    %c0_6 = arith.constant 0 : index
    %9 = vector.load %arg4[%c0_5, %c0_6] : memref<128x128xf32, #tpu.memory_space<vmem>>, vector<128x128xf32>
    tpu.vector_store %arg4[%c0_5, %c0_6], %8 {strides = array<i32>} : memref<128x128xf32, #tpu.memory_space<vmem>>, vector<128x128xf32>,
    return
  }
  func.func @transform_0(%arg0: i32) -> (i32, i32) {
    %c0_i32 = arith.constant 0 : i32
    %c0_i32_0 = arith.constant 0 : i32
    return %arg0, %c0_i32 : i32, i32
  }
  func.func @transform_1(%arg0: i32) -> (i32, i32) {
    %c0_i32 = arith.constant 0 : i32
    %c0_i32_0 = arith.constant 0 : i32
    %c0_i32_1 = arith.constant 0 : i32
    return %c0_i32, %c0_i32_0 : i32, i32
  }
  func.func @transform_2(%arg0: i32) -> (i32, i32) {
    %c0_i32 = arith.constant 0 : i32
    %c0_i32_0 = arith.constant 0 : i32
    %c0_i32_1 = arith.constant 0 : i32
    return %c0_i32, %c0_i32_0 : i32, i32
  }
  func.func @transform_3(%arg0: i32) -> (i32, i32) {
    %c0_i32 = arith.constant 0 : i32
    %c0_i32_0 = arith.constant 0 : i32
    return %arg0, %c0_i32 : i32, i32
  }
}

module attributes {stable_mosaic.version = 11 : i64} {
  func.func @_conv_stats_kernel(%arg0: i32, %arg1: memref<128x72xbf16, #tpu.memory_space<vmem>>, %arg2: memref<72x128xbf16, #tpu.memory_space<vmem>>, %arg3: memref<128x128xf32, #tpu.memory_space<vmem>>, %arg4: memref<1x128xf32, #tpu.memory_space<vmem>>, %arg5: memref<1x128xf32, #tpu.memory_space<vmem>>) attributes {dimension_semantics = [#tpu.dimension_semantics<arbitrary>], iteration_bounds = array<i64: 1>, scalar_prefetch = 0 : i64, scratch_operands = 0 : i64, tpu.core_type = #tpu.core_type<tc>, window_params = [{transform_indices = @transform_0, window_bounds = array<i64: 128, 72>}, {pipeline_mode = #tpu.pipeline_mode<synchronous>, transform_indices = @transform_1, window_bounds = array<i64: 72, 128>}, {transform_indices = @transform_2, window_bounds = array<i64: 128, 128>}, {pipeline_mode = #tpu.pipeline_mode<synchronous>, transform_indices = @transform_3, window_bounds = array<i64: 1, 128>}, {pipeline_mode = #tpu.pipeline_mode<synchronous>, transform_indices = @transform_4, window_bounds = array<i64: 1, 128>}]} {
    %c0_i32 = arith.constant 0 : i32
    %0 = arith.cmpi eq, %arg0, %c0_i32 : i32
    %1 = arith.extui %0 : i1 to i32
    %c0_i32_0 = arith.constant 0 : i32
    %2 = arith.cmpi ne, %1, %c0_i32_0 : i32
    scf.if %2 {
      %cst_16 = arith.constant 0.000000e+00 : f32
      %18 = vector.broadcast %cst_16 : f32 to vector<1x128xf32>
      %c0_17 = arith.constant 0 : index
      %c0_18 = arith.constant 0 : index
      %19 = vector.load %arg4[%c0_17, %c0_18] : memref<1x128xf32, #tpu.memory_space<vmem>>, vector<1x128xf32>
      tpu.vector_store %arg4[%c0_17, %c0_18], %18 {strides = array<i32>} : memref<1x128xf32, #tpu.memory_space<vmem>>, vector<1x128xf32>,
      %cst_19 = arith.constant 0.000000e+00 : f32
      %20 = vector.broadcast %cst_19 : f32 to vector<1x128xf32>
      %c0_20 = arith.constant 0 : index
      %c0_21 = arith.constant 0 : index
      %21 = vector.load %arg5[%c0_20, %c0_21] : memref<1x128xf32, #tpu.memory_space<vmem>>, vector<1x128xf32>
      tpu.vector_store %arg5[%c0_20, %c0_21], %20 {strides = array<i32>} : memref<1x128xf32, #tpu.memory_space<vmem>>, vector<1x128xf32>,
    } else {
    }
    %c0 = arith.constant 0 : index
    %c0_1 = arith.constant 0 : index
    %3 = vector.load %arg1[%c0, %c0_1] : memref<128x72xbf16, #tpu.memory_space<vmem>>, vector<128x72xbf16>
    %c0_2 = arith.constant 0 : index
    %c0_3 = arith.constant 0 : index
    %4 = vector.load %arg2[%c0_2, %c0_3] : memref<72x128xbf16, #tpu.memory_space<vmem>>, vector<72x128xbf16>
    %cst = arith.constant dense<0.000000e+00> : vector<128x128xf32>
    %5 = tpu.matmul %3, %4, %cst {dimension_numbers = #tpu.dot_dimension_numbers<[1], [0], [0], [1], [0, 0, 1, 1], [], []>} : vector<128x72xbf16>, vector<72x128xbf16>, vector<128x128xf32> -> vector<128x128xf32>
    %c0_4 = arith.constant 0 : index
    %c0_5 = arith.constant 0 : index
    %6 = vector.load %arg3[%c0_4, %c0_5] : memref<128x128xf32, #tpu.memory_space<vmem>>, vector<128x128xf32>
    tpu.vector_store %arg3[%c0_4, %c0_5], %5 {strides = array<i32>} : memref<128x128xf32, #tpu.memory_space<vmem>>, vector<128x128xf32>,
    %c0_6 = arith.constant 0 : index
    %c0_7 = arith.constant 0 : index
    %7 = vector.load %arg4[%c0_6, %c0_7] : memref<1x128xf32, #tpu.memory_space<vmem>>, vector<1x128xf32>
    %cst_8 = arith.constant dense<0.000000e+00> : vector<128xf32>
    %8 = vector.multi_reduction <add>, %5, %cst_8 [0] : vector<128x128xf32> to vector<128xf32>
    %9 = vector.shape_cast %8 : vector<128xf32> to vector<1x128xf32>
    %10 = arith.addf %7, %9 : vector<1x128xf32>
    %c0_9 = arith.constant 0 : index
    %c0_10 = arith.constant 0 : index
    %11 = vector.load %arg4[%c0_9, %c0_10] : memref<1x128xf32, #tpu.memory_space<vmem>>, vector<1x128xf32>
    tpu.vector_store %arg4[%c0_9, %c0_10], %10 {strides = array<i32>} : memref<1x128xf32, #tpu.memory_space<vmem>>, vector<1x128xf32>,
    %c0_11 = arith.constant 0 : index
    %c0_12 = arith.constant 0 : index
    %12 = vector.load %arg5[%c0_11, %c0_12] : memref<1x128xf32, #tpu.memory_space<vmem>>, vector<1x128xf32>
    %13 = arith.mulf %5, %5 : vector<128x128xf32>
    %cst_13 = arith.constant dense<0.000000e+00> : vector<128xf32>
    %14 = vector.multi_reduction <add>, %13, %cst_13 [0] : vector<128x128xf32> to vector<128xf32>
    %15 = vector.shape_cast %14 : vector<128xf32> to vector<1x128xf32>
    %16 = arith.addf %12, %15 : vector<1x128xf32>
    %c0_14 = arith.constant 0 : index
    %c0_15 = arith.constant 0 : index
    %17 = vector.load %arg5[%c0_14, %c0_15] : memref<1x128xf32, #tpu.memory_space<vmem>>, vector<1x128xf32>
    tpu.vector_store %arg5[%c0_14, %c0_15], %16 {strides = array<i32>} : memref<1x128xf32, #tpu.memory_space<vmem>>, vector<1x128xf32>,
    return
  }
  func.func @transform_0(%arg0: i32) -> (i32, i32) {
    %c0_i32 = arith.constant 0 : i32
    %c0_i32_0 = arith.constant 0 : i32
    return %arg0, %c0_i32 : i32, i32
  }
  func.func @transform_1(%arg0: i32) -> (i32, i32) {
    %c0_i32 = arith.constant 0 : i32
    %c0_i32_0 = arith.constant 0 : i32
    %c0_i32_1 = arith.constant 0 : i32
    return %c0_i32, %c0_i32_0 : i32, i32
  }
  func.func @transform_2(%arg0: i32) -> (i32, i32) {
    %c0_i32 = arith.constant 0 : i32
    %c0_i32_0 = arith.constant 0 : i32
    return %arg0, %c0_i32 : i32, i32
  }
  func.func @transform_3(%arg0: i32) -> (i32, i32) {
    %c0_i32 = arith.constant 0 : i32
    %c0_i32_0 = arith.constant 0 : i32
    %c0_i32_1 = arith.constant 0 : i32
    return %c0_i32, %c0_i32_0 : i32, i32
  }
  func.func @transform_4(%arg0: i32) -> (i32, i32) {
    %c0_i32 = arith.constant 0 : i32
    %c0_i32_0 = arith.constant 0 : i32
    %c0_i32_1 = arith.constant 0 : i32
    return %c0_i32, %c0_i32_0 : i32, i32
  }
}

</mosaic_0001>

<bundles_post_ra>
// kernel: a_call__.5
= control target key start
LH: loop header
LB: loop body
LE: loop exit
PB: predicated region body
PF: predicated region fallthrough
CT: control target
= control target key end

     0   :  { %s254_s0 = inlined_call_operand.vmem [shape: f32[128,128], index: 0, kind: input, shape index: {}]   ;;  %s255_s1 = inlined_call_operand.vmem [shape: f32[1,128], index: 1, kind: input, shape index: {}]   ;;  %s256_s2 = inlined_call_operand.vmem [shape: f32[1,128], index: 2, kind: input, shape index: {}]   ;;  %s257_s3 = inlined_call_operand.vmem [shape: f32[128,128], index: 3, kind: output, shape index: {}]  }
   0x1   :  { %v14_v0 = vld [vmem:[%s254_s0] sm:$0xff]  ;;  %v15_v4 = vld [vmem:[%s254_s0 + $0x8] sm:$0xff]  ;;  %v16_v5 = vld [vmem:[%s254_s0 + $0x10] sm:$0xff] }
   0x2   :  { %v112_v1 = vld [vmem:[%s255_s1] ss:$0 sm:$0xff]  ;;  %v17_v6 = vld [vmem:[%s254_s0 + $0x18] sm:$0xff]  ;;  %v19_v11 = vld [vmem:[%s254_s0 + $0x28] sm:$0xff] }
   0x3   :  { %v143_v2 = vld [vmem:[%s256_s2] ss:$0 sm:$0xff]  ;;  %v37_v3 = vmul.f32 %v112_v1, %v14_v0  ;;  %v38_v7 = vmul.f32 %v112_v1, %v15_v4  ;;  %v39_v8 = vmul.f32 %v112_v1, %v16_v5  ;;  %v40_v9 = vmul.f32 %v112_v1, %v17_v6  ;;  %v20_v12 = vld [vmem:[%s254_s0 + $0x30] sm:$0xff]  ;;  %v21_v17 = vld [vmem:[%s254_s0 + $0x38] sm:$0xff] }
   0x4   :  { %v18_v10 = vld [vmem:[%s254_s0 + $0x20] sm:$0xff]  ;;  %v42_v15 = vmul.f32 %v112_v1, %v19_v11  ;;  %v43_v16 = vmul.f32 %v112_v1, %v20_v12  ;;  %v44_v21 = vmul.f32 %v112_v1, %v21_v17  ;;  %v23_v27 = vld [vmem:[%s254_s0 + $0x48] sm:$0xff]  ;;  %v24_v28 = vld [vmem:[%s254_s0 + $0x50] sm:$0xff] }
   0x5   :  { %v60_v13 = vadd.f32 %v143_v2, %v37_v3  ;;  %v41_v14 = vmul.f32 %v112_v1, %v18_v10  ;;  %v61_v18 = vadd.f32 %v143_v2, %v38_v7  ;;  %v62_v19 = vadd.f32 %v143_v2, %v39_v8  ;;  %v22_v22 = vld [vmem:[%s254_s0 + $0x40] sm:$0xff]  ;;  %v25_v29 = vld [vmem:[%s254_s0 + $0x58] sm:$0xff]  ;;  %v27_v35 = vld [vmem:[%s254_s0 + $0x68] sm:$0xff] }
   0x6   :  { %v63_v20 = vadd.f32 %v143_v2, %v40_v9  ;;  %v65_v25 = vadd.f32 %v143_v2, %v42_v15  ;;  %v66_v26 = vadd.f32 %v143_v2, %v43_v16  ;;  %v67_v33 = vadd.f32 %v143_v2, %v44_v21  ;;  %v26_v34 = vld [vmem:[%s254_s0 + $0x60] sm:$0xff]  ;;  %v28_v36 = vld [vmem:[%s254_s0 + $0x70] sm:$0xff]  ;;  %v29_v41 = vld [vmem:[%s254_s0 + $0x78] sm:$0xff] }
   0x7   :  { %v76_v23 = vmax.f32 %v60_v13, 0.0  ;;  %v64_v24 = vadd.f32 %v143_v2, %v41_v14  ;;  %v77_v30 = vmax.f32 %v61_v18, 0.0  ;;  %v78_v31 = vmax.f32 %v62_v19, 0.0 }
   0x8   :  { %v79_v32 = vmax.f32 %v63_v20, 0.0  ;;  %v81_v38 = vmax.f32 %v65_v25, 0.0  ;;  %v82_v39 = vmax.f32 %v66_v26, 0.0  ;;  %v45_v40 = vmul.f32 %v112_v1, %v22_v22 }
   0x9   :  { %92 = vst [vmem:[%s257_s3] sm:$0xff] %v76_v23  ;;  %v80_v37 = vmax.f32 %v64_v24, 0.0  ;;  %93 = vst [vmem:[%s257_s3 + $0x8] sm:$0xff] %v77_v30  ;;  %v83_v42 = vmax.f32 %v67_v33, 0.0  ;;  %v46_v43 = vmul.f32 %v112_v1, %v23_v27  ;;  %v47_v44 = vmul.f32 %v112_v1, %v24_v28 }
   0xa   :  { %94 = vst [vmem:[%s257_s3 + $0x10] sm:$0xff] %v78_v31  ;;  %95 = vst [vmem:[%s257_s3 + $0x18] sm:$0xff] %v79_v32  ;;  %v48_v45 = vmul.f32 %v112_v1, %v25_v29  ;;  %v68_v46 = vadd.f32 %v143_v2, %v45_v40  ;;  %v49_v47 = vmul.f32 %v112_v1, %v26_v34 }
   0xb   :  { %96 = vst [vmem:[%s257_s3 + $0x20] sm:$0xff] %v80_v37  ;;  %97 = vst [vmem:[%s257_s3 + $0x28] sm:$0xff] %v81_v38  ;;  %v50_v48 = vmul.f32 %v112_v1, %v27_v35  ;;  %v51_v49 = vmul.f32 %v112_v1, %v28_v36  ;;  %v69_v50 = vadd.f32 %v143_v2, %v46_v43 }
   0xc   :  { %98 = vst [vmem:[%s257_s3 + $0x30] sm:$0xff] %v82_v39  ;;  %99 = vst [vmem:[%s257_s3 + $0x38] sm:$0xff] %v83_v42  ;;  %v70_v51 = vadd.f32 %v143_v2, %v47_v44  ;;  %v71_v52 = vadd.f32 %v143_v2, %v48_v45  ;;  %v52_v53 = vmul.f32 %v112_v1, %v29_v41  ;;  %v84_v54 = vmax.f32 %v68_v46, 0.0 }
   0xd   :  { %v72_v55 = vadd.f32 %v143_v2, %v49_v47  ;;  %v73_v56 = vadd.f32 %v143_v2, %v50_v48  ;;  %v74_v57 = vadd.f32 %v143_v2, %v51_v49  ;;  %v85_v58 = vmax.f32 %v69_v50, 0.0 }
   0xe   :  { %v86_v59 = vmax.f32 %v70_v51, 0.0  ;;  %v87_v60 = vmax.f32 %v71_v52, 0.0  ;;  %v75_v61 = vadd.f32 %v143_v2, %v52_v53  ;;  %100 = vst [vmem:[%s257_s3 + $0x40] sm:$0xff] %v84_v54 }
   0xf   :  { %v88_v62 = vmax.f32 %v72_v55, 0.0  ;;  %v89_v63 = vmax.f32 %v73_v56, 0.0  ;;  %v90_v0 = vmax.f32 %v74_v57, 0.0  ;;  %101 = vst [vmem:[%s257_s3 + $0x48] sm:$0xff] %v85_v58 }
  0x10   :  { %102 = vst [vmem:[%s257_s3 + $0x50] sm:$0xff] %v86_v59  ;;  %103 = vst [vmem:[%s257_s3 + $0x58] sm:$0xff] %v87_v60  ;;  %v91_v1 = vmax.f32 %v75_v61, 0.0 }
  0x11   :  { %104 = vst [vmem:[%s257_s3 + $0x60] sm:$0xff] %v88_v62  ;;  %105 = vst [vmem:[%s257_s3 + $0x68] sm:$0xff] %v89_v63 }
  0x12   :  { %106 = vst [vmem:[%s257_s3 + $0x70] sm:$0xff] %v90_v0  ;;  %107 = vst [vmem:[%s257_s3 + $0x78] sm:$0xff] %v91_v1 }

// kernel: a_call__.4
= control target key start
LH: loop header
LB: loop body
LE: loop exit
PB: predicated region body
PF: predicated region fallthrough
CT: control target
= control target key end

     0   :  { %vm97_vm0 = vcmask 326656   ;;  %vm122_vm1 = vcmask 1043456   ;;  %v387_v12 = vmov 0.0   ;;  %s520_s1 = inlined_call_operand.vmem [shape: bf16[40,128], index: 1, kind: input, shape index: {}]   ;;  %s521_s0 = inlined_call_operand.vmem [shape: bf16[128,40], index: 0, kind: input, shape index: {}]   ;;  %s522_s3 = inlined_call_operand.vmem [shape: f32[1,128], index: 3, kind: output, shape index: {1}]   ;;  %s523_s4 = inlined_call_operand.vmem [shape: f32[1,128], index: 4, kind: output, shape index: {2}]   ;;  %s524_s2 = inlined_call_operand.vmem [shape: f32[128,128], index: 2, kind: output, shape index: {0}]  }
   0x1   :  { %v376_v0 = vld [vmem:[%s520_s1] sm:$0xff]   ;;  %v377_v1 = vld [vmem:[%s520_s1 + $0x8] sm:$0xff]   ;;  %v378_v3 = vld [vmem:[%s520_s1 + $0x10] ss:$0 sps:$4 sm:$0xff]   ;;  %19 = vst [vmem:[%s522_s3] sm:$0x1] %v387_v12 }
   0x2   :  { %345 = vmatprep.subr.bf16.mxu0 %v376_v0  ;;  %367 = vmatprep.subr.bf16.mxu1 %v376_v0  ;;  %v379_v2 = vld [vmem:[%s521_s0] sm:$0xff]   ;;  %v124_v5 = vsel %vm122_vm1, %v378_v3, 0  ;;  %v380_v6 = vld [vmem:[%s521_s0 + $0x8] sm:$0xff]   ;;  %v381_v8 = vld [vmem:[%s521_s0 + $0x10] sm:$0xff]   ;;  %20 = vst [vmem:[%s523_s4] sm:$0x1] %v387_v12 }
   0x3   :  { %346 = vmatpush3.bf16.msra.mxu0 %v376_v0  ;;  %370 = vmatpush3.bf16.msra.mxu1 %v376_v0  ;;  %v383_v4 = vld [vmem:[%s521_s0 + $0x20] sm:$0xff]   ;;  %v384_v7 = vld [vmem:[%s521_s0 + $0x28] sm:$0xff]   ;;  %v385_v9 = vld [vmem:[%s521_s0 + $0x30] sm:$0xff]  }
   0x4   :  { %347 = vmatprep.subr.bf16.mxu0 %v377_v1  ;;  %368 = vmatprep.subr.bf16.mxu1 %v377_v1  ;;  %v382_v10 = vld [vmem:[%s521_s0 + $0x18] sm:$0xff]  }
   0x5   :  { %351 = vmatprep.mubr.msk.bf16.mxu0 %vm97_vm0, %v379_v2  ;;  %359 = vmatprep.mubr.msk.bf16.mxu1 %vm97_vm0, %v383_v4  ;;  %v386_v11 = vld [vmem:[%s521_s0 + $0x38] sm:$0xff]  }
   0x7   :  { %348 = vmatpush3.bf16.msra.mxu0 %v377_v1  ;;  %371 = vmatpush3.bf16.msra.mxu1 %v377_v1 }
   0x8   :  { %373 = vmatprep.subr.msk.bf16.mxu0 %vm122_vm1, %v378_v3  ;;  %374 = vmatprep.subr.msk.bf16.mxu1 %vm122_vm1, %v378_v3 }
   0xb   :  { %350 = vmatpush3.bf16.msra.mxu0 %v124_v5  ;;  %372 = vmatpush3.bf16.msra.mxu1 %v124_v5 }
   0xe   :  { %352 = vmatmul.mubr.msk.bf16.vlgmr.msra.gmra.mrb[0].mxu0 %vm97_vm0, %v380_v6  ;;  %360 = vmatmul.mubr.msk.bf16.vlgmr.msra.gmra.mrb[0].mxu1 %vm97_vm0, %v384_v7 }
   0xf   :  { %355 = vmatprep.mubr.msk.bf16.mxu0 %vm97_vm0, %v381_v8  ;;  %363 = vmatprep.mubr.msk.bf16.mxu1 %vm97_vm0, %v385_v9 }
  0x16   :  { %356 = vmatmul.mubr.msk.bf16.gmra.mrb[4].mxu0 %vm97_vm0, %v382_v10  ;;  %364 = vmatmul.mubr.msk.bf16.gmra.mrb[4].mxu1 %vm97_vm0, %v386_v11 }
  0xe1   :  { %v353_v13 = vpop.f32.mrb[0].mxu0  ;;  %v361_v14 = vpop.f32.mrb[0].mxu1 }
  0xe2   :  { %225 = vst [vmem:[%s524_s2 + $0x10] sm:$0xff] %v353_v13  ;;  %v160_v15 = vpop.f32.mrb[1].mxu0  ;;  %233 = vst [vmem:[%s524_s2 + $0x50] sm:$0xff] %v361_v14  ;;  %v192_v16 = vpop.f32.mrb[1].mxu1  ;;  %v266_v24 = vmul.f32 %v353_v13, %v353_v13  ;;  %v274_v56 = vmul.f32 %v361_v14, %v361_v14 }
  0xe3   :  { %223 = vst [vmem:[%s524_s2] sm:$0xff] %v160_v15  ;;  %v354_v17 = vpop.f32.mrb[2].mxu0  ;;  %231 = vst [vmem:[%s524_s2 + $0x40] sm:$0xff] %v192_v16  ;;  %v362_v18 = vpop.f32.mrb[2].mxu1  ;;  %v264_v21 = vmul.f32 %v160_v15, %v160_v15  ;;  %v272_v50 = vmul.f32 %v192_v16, %v192_v16 }
  0xe4   :  { %226 = vst [vmem:[%s524_s2 + $0x18] sm:$0xff] %v354_v17  ;;  %v163_v19 = vpop.f32.mrb[3].mxu0  ;;  %234 = vst [vmem:[%s524_s2 + $0x58] sm:$0xff] %v362_v18  ;;  %v195_v20 = vpop.f32.mrb[3].mxu1  ;;  %v267_v27 = vmul.f32 %v354_v17, %v354_v17  ;;  %v275_v59 = vmul.f32 %v362_v18, %v362_v18 }
  0xe5   :  { %224 = vst [vmem:[%s524_s2 + $0x8] sm:$0xff] %v163_v19  ;;  %v240_v22 = vadd.f32 %v163_v19, %v160_v15  ;;  %v265_v23 = vmul.f32 %v163_v19, %v163_v19  ;;  %232 = vst [vmem:[%s524_s2 + $0x48] sm:$0xff] %v195_v20  ;;  %v273_v55 = vmul.f32 %v195_v20, %v195_v20 }
  0xe7   :  { %v241_v25 = vadd.f32 %v353_v13, %v240_v22  ;;  %v280_v26 = vadd.f32 %v265_v23, %v264_v21  ;;  %v263_v23 = vld [vmem:[%s523_s4] sm:$0x1] }
  0xe9   :  { %v281_v28 = vadd.f32 %v280_v26, %v266_v24  ;;  %v357_v29 = vpop.f32.mrb[4].mxu0  ;;  %v242_v30 = vadd.f32 %v354_v17, %v241_v25  ;;  %v365_v31 = vpop.f32.mrb[4].mxu1 }
  0xea   :  { %229 = vst [vmem:[%s524_s2 + $0x30] sm:$0xff] %v357_v29  ;;  %v176_v32 = vpop.f32.mrb[5].mxu0  ;;  %237 = vst [vmem:[%s524_s2 + $0x70] sm:$0xff] %v365_v31  ;;  %v208_v33 = vpop.f32.mrb[5].mxu1  ;;  %v270_v44 = vmul.f32 %v357_v29, %v357_v29  ;;  %v278_v4 = vmul.f32 %v365_v31, %v365_v31 }
  0xeb   :  { %227 = vst [vmem:[%s524_s2 + $0x20] sm:$0xff] %v176_v32  ;;  %v243_v34 = vadd.f32 %v242_v30, %v176_v32  ;;  %v268_v35 = vmul.f32 %v176_v32, %v176_v32  ;;  %v282_v36 = vadd.f32 %v281_v28, %v267_v27  ;;  %v358_v37 = vpop.f32.mrb[6].mxu0  ;;  %235 = vst [vmem:[%s524_s2 + $0x60] sm:$0xff] %v208_v33  ;;  %v366_v38 = vpop.f32.mrb[6].mxu1 }
  0xec   :  { %230 = vst [vmem:[%s524_s2 + $0x38] sm:$0xff] %v358_v37  ;;  %v179_v39 = vpop.f32.mrb[7].mxu0  ;;  %238 = vst [vmem:[%s524_s2 + $0x78] sm:$0xff] %v366_v38  ;;  %v211_v40 = vpop.f32.mrb[7].mxu1  ;;  %v271_v47 = vmul.f32 %v358_v37, %v358_v37  ;;  %v276_v62 = vmul.f32 %v208_v33, %v208_v33  ;;  %v279_v7 = vmul.f32 %v366_v38, %v366_v38 }
  0xed   :  { %v283_v41 = vadd.f32 %v282_v36, %v268_v35  ;;  %228 = vst [vmem:[%s524_s2 + $0x28] sm:$0xff] %v179_v39  ;;  %v244_v42 = vadd.f32 %v243_v34, %v179_v39  ;;  %v269_v43 = vmul.f32 %v179_v39, %v179_v39  ;;  %236 = vst [vmem:[%s524_s2 + $0x68] sm:$0xff] %v211_v40 }
  0xee   :  { %v277_v3 = vmul.f32 %v211_v40, %v211_v40 }
  0xef   :  { %v245_v45 = vadd.f32 %v357_v29, %v244_v42  ;;  %v284_v46 = vadd.f32 %v283_v41, %v269_v43 }
  0xf1   :  { %v285_v48 = vadd.f32 %v284_v46, %v270_v44  ;;  %v246_v49 = vadd.f32 %v358_v37, %v245_v45 }
  0xf3   :  { %v247_v51 = vadd.f32 %v246_v49, %v192_v16  ;;  %v286_v52 = vadd.f32 %v285_v48, %v271_v47 }
  0xf5   :  { %v287_v53 = vadd.f32 %v286_v52, %v272_v50  ;;  %v248_v54 = vadd.f32 %v247_v51, %v195_v20  ;;  %v239_v20 = vld [vmem:[%s522_s3] sm:$0x1] }
  0xf7   :  { %v249_v57 = vadd.f32 %v361_v14, %v248_v54  ;;  %v288_v58 = vadd.f32 %v287_v53, %v273_v55 }
  0xf9   :  { %v289_v60 = vadd.f32 %v288_v58, %v274_v56  ;;  %v250_v61 = vadd.f32 %v362_v18, %v249_v57 }
  0xfb   :  { %v251_v63 = vadd.f32 %v250_v61, %v208_v33  ;;  %v290_v0 = vadd.f32 %v289_v60, %v275_v59 }
  0xfd   :  { %v291_v1 = vadd.f32 %v290_v0, %v276_v62  ;;  %v252_v2 = vadd.f32 %v251_v63, %v211_v40 }
  0xff   :  { %v253_v5 = vadd.f32 %v365_v31, %v252_v2  ;;  %v292_v6 = vadd.f32 %v291_v1, %v277_v3 }
 0x101   :  { %v254_v8 = vadd.f32 %v366_v38, %v253_v5  ;;  %v293_v9 = vadd.f32 %v292_v6, %v278_v4 }
 0x103   :  { %v255_v10 = vrot.slane %v254_v8, 4  ;;  %v294_v11 = vadd.f32 %v293_v9, %v279_v7 }
 0x105   :  { %v256_v12 = vadd.f32 %v255_v10, %v254_v8  ;;  %v295_v13 = vrot.slane %v294_v11, 4 }
 0x107   :  { %v257_v14 = vrot.slane %v256_v12, 2  ;;  %v296_v15 = vadd.f32 %v295_v13, %v294_v11 }
 0x109   :  { %v258_v16 = vadd.f32 %v257_v14, %v256_v12  ;;  %v297_v17 = vrot.slane %v296_v15, 2 }
 0x10b   :  { %v259_v18 = vrot.slane %v258_v16, 1  ;;  %v298_v19 = vadd.f32 %v297_v17, %v296_v15 }
 0x10d   :  { %v260_v21 = vadd.f32 %v259_v18, %v258_v16  ;;  %v299_v22 = vrot.slane %v298_v19, 1 }
 0x10f   :  { %v261_v24 = vadd.f32 %v260_v21, %v239_v20  ;;  %v300_v25 = vadd.f32 %v299_v22, %v298_v19 }
 0x111   :  { %262 = vst [vmem:[%s522_s3] sm:$0x1] %v261_v24  ;;  %v301_v26 = vadd.f32 %v300_v25, %v263_v23 }
 0x113   :  { %302 = vst [vmem:[%s523_s4] sm:$0x1] %v301_v26 }

// kernel: a_call__.6
= control target key start
LH: loop header
LB: loop body
LE: loop exit
PB: predicated region body
PF: predicated region fallthrough
CT: control target
= control target key end

     0   :  { %vm113_vm0 = vcmask 588800   ;;  %vm138_vm1 = vcmask 1043456   ;;  %v417_v14 = vmov 0.0   ;;  %s556_s1 = inlined_call_operand.vmem [shape: bf16[72,128], index: 1, kind: input, shape index: {}]   ;;  %s557_s0 = inlined_call_operand.vmem [shape: bf16[128,72], index: 0, kind: input, shape index: {}]   ;;  %s558_s3 = inlined_call_operand.vmem [shape: f32[1,128], index: 3, kind: output, shape index: {1}]   ;;  %s559_s4 = inlined_call_operand.vmem [shape: f32[1,128], index: 4, kind: output, shape index: {2}]   ;;  %s560_s2 = inlined_call_operand.vmem [shape: f32[128,128], index: 2, kind: output, shape index: {0}]  }
   0x1   :  { %v404_v0 = vld [vmem:[%s556_s1] sm:$0xff]   ;;  %v405_v1 = vld [vmem:[%s556_s1 + $0x8] sm:$0xff]   ;;  %v406_v2 = vld [vmem:[%s556_s1 + $0x10] sm:$0xff]   ;;  %19 = vst [vmem:[%s558_s3] sm:$0x1] %v417_v14 }
   0x2   :  { %365 = vmatprep.subr.bf16.mxu0 %v404_v0  ;;  %391 = vmatprep.subr.bf16.mxu1 %v404_v0  ;;  %v409_v3 = vld [vmem:[%s557_s0] sm:$0xff]   ;;  %v407_v4 = vld [vmem:[%s556_s1 + $0x18] sm:$0xff]   ;;  %v410_v8 = vld [vmem:[%s557_s0 + $0x8] sm:$0xff]   ;;  %20 = vst [vmem:[%s559_s4] sm:$0x1] %v417_v14 }
   0x3   :  { %366 = vmatpush3.bf16.msra.mxu0 %v404_v0  ;;  %396 = vmatpush3.bf16.msra.mxu1 %v404_v0  ;;  %v413_v5 = vld [vmem:[%s557_s0 + $0x20] sm:$0xff]   ;;  %v414_v9 = vld [vmem:[%s557_s0 + $0x28] sm:$0xff]   ;;  %v411_v10 = vld [vmem:[%s557_s0 + $0x10] sm:$0xff]  }
   0x4   :  { %367 = vmatprep.subr.bf16.mxu0 %v405_v1  ;;  %392 = vmatprep.subr.bf16.mxu1 %v405_v1  ;;  %v408_v6 = vld [vmem:[%s556_s1 + $0x20] ss:$0 sps:$4 sm:$0xff]   ;;  %v415_v11 = vld [vmem:[%s557_s0 + $0x30] sm:$0xff]   ;;  %v412_v12 = vld [vmem:[%s557_s0 + $0x18] sm:$0xff]  }
   0x5   :  { %375 = vmatprep.mubr.msk.bf16.mxu0 %vm113_vm0, %v409_v3  ;;  %383 = vmatprep.mubr.msk.bf16.mxu1 %vm113_vm0, %v413_v5  ;;  %v140_v7 = vsel %vm138_vm1, %v408_v6, 0  ;;  %v416_v13 = vld [vmem:[%s557_s0 + $0x38] sm:$0xff]  }
   0x7   :  { %368 = vmatpush3.bf16.msra.mxu0 %v405_v1  ;;  %397 = vmatpush3.bf16.msra.mxu1 %v405_v1 }
   0x8   :  { %369 = vmatprep.subr.bf16.mxu0 %v406_v2  ;;  %393 = vmatprep.subr.bf16.mxu1 %v406_v2 }
   0xb   :  { %370 = vmatpush3.bf16.msra.mxu0 %v406_v2  ;;  %398 = vmatpush3.bf16.msra.mxu1 %v406_v2 }
   0xc   :  { %371 = vmatprep.subr.bf16.mxu0 %v407_v4  ;;  %394 = vmatprep.subr.bf16.mxu1 %v407_v4 }
   0xf   :  { %372 = vmatpush3.bf16.msra.mxu0 %v407_v4  ;;  %399 = vmatpush3.bf16.msra.mxu1 %v407_v4 }
  0x10   :  { %401 = vmatprep.subr.msk.bf16.mxu0 %vm138_vm1, %v408_v6  ;;  %402 = vmatprep.subr.msk.bf16.mxu1 %vm138_vm1, %v408_v6 }
  0x13   :  { %374 = vmatpush3.bf16.msra.mxu0 %v140_v7  ;;  %400 = vmatpush3.bf16.msra.mxu1 %v140_v7 }
  0x16   :  { %376 = vmatmul.mubr.msk.bf16.vlgmr.msra.gmra.mrb[0].mxu0 %vm113_vm0, %v410_v8  ;;  %384 = vmatmul.mubr.msk.bf16.vlgmr.msra.gmra.mrb[0].mxu1 %vm113_vm0, %v414_v9 }
  0x17   :  { %379 = vmatprep.mubr.msk.bf16.mxu0 %vm113_vm0, %v411_v10  ;;  %387 = vmatprep.mubr.msk.bf16.mxu1 %vm113_vm0, %v415_v11 }
  0x1e   :  { %380 = vmatmul.mubr.msk.bf16.gmra.mrb[4].mxu0 %vm113_vm0, %v412_v12  ;;  %388 = vmatmul.mubr.msk.bf16.gmra.mrb[4].mxu1 %vm113_vm0, %v416_v13 }
  0xe9   :  { %v377_v15 = vpop.f32.mrb[0].mxu0  ;;  %v385_v16 = vpop.f32.mrb[0].mxu1 }
  0xea   :  { %241 = vst [vmem:[%s560_s2 + $0x10] sm:$0xff] %v377_v15  ;;  %v176_v17 = vpop.f32.mrb[1].mxu0  ;;  %249 = vst [vmem:[%s560_s2 + $0x50] sm:$0xff] %v385_v16  ;;  %v208_v18 = vpop.f32.mrb[1].mxu1  ;;  %v282_v26 = vmul.f32 %v377_v15, %v377_v15  ;;  %v290_v58 = vmul.f32 %v385_v16, %v385_v16 }
  0xeb   :  { %239 = vst [vmem:[%s560_s2] sm:$0xff] %v176_v17  ;;  %v378_v19 = vpop.f32.mrb[2].mxu0  ;;  %247 = vst [vmem:[%s560_s2 + $0x40] sm:$0xff] %v208_v18  ;;  %v386_v20 = vpop.f32.mrb[2].mxu1  ;;  %v280_v23 = vmul.f32 %v176_v17, %v176_v17  ;;  %v288_v52 = vmul.f32 %v208_v18, %v208_v18 }
  0xec   :  { %242 = vst [vmem:[%s560_s2 + $0x18] sm:$0xff] %v378_v19  ;;  %v179_v21 = vpop.f32.mrb[3].mxu0  ;;  %250 = vst [vmem:[%s560_s2 + $0x58] sm:$0xff] %v386_v20  ;;  %v211_v22 = vpop.f32.mrb[3].mxu1  ;;  %v283_v29 = vmul.f32 %v378_v19, %v378_v19  ;;  %v291_v61 = vmul.f32 %v386_v20, %v386_v20 }
  0xed   :  { %240 = vst [vmem:[%s560_s2 + $0x8] sm:$0xff] %v179_v21  ;;  %v256_v24 = vadd.f32 %v179_v21, %v176_v17  ;;  %v281_v25 = vmul.f32 %v179_v21, %v179_v21  ;;  %248 = vst [vmem:[%s560_s2 + $0x48] sm:$0xff] %v211_v22  ;;  %v289_v57 = vmul.f32 %v211_v22, %v211_v22 }
  0xef   :  { %v257_v27 = vadd.f32 %v377_v15, %v256_v24  ;;  %v296_v28 = vadd.f32 %v281_v25, %v280_v23  ;;  %v279_v25 = vld [vmem:[%s559_s4] sm:$0x1] }
  0xf1   :  { %v297_v30 = vadd.f32 %v296_v28, %v282_v26  ;;  %v381_v31 = vpop.f32.mrb[4].mxu0  ;;  %v258_v32 = vadd.f32 %v378_v19, %v257_v27  ;;  %v389_v33 = vpop.f32.mrb[4].mxu1 }
  0xf2   :  { %245 = vst [vmem:[%s560_s2 + $0x30] sm:$0xff] %v381_v31  ;;  %v192_v34 = vpop.f32.mrb[5].mxu0  ;;  %253 = vst [vmem:[%s560_s2 + $0x70] sm:$0xff] %v389_v33  ;;  %v224_v35 = vpop.f32.mrb[5].mxu1  ;;  %v286_v46 = vmul.f32 %v381_v31, %v381_v31  ;;  %v294_v6 = vmul.f32 %v389_v33, %v389_v33 }
  0xf3   :  { %243 = vst [vmem:[%s560_s2 + $0x20] sm:$0xff] %v192_v34  ;;  %v259_v36 = vadd.f32 %v258_v32, %v192_v34  ;;  %v284_v37 = vmul.f32 %v192_v34, %v192_v34  ;;  %v298_v38 = vadd.f32 %v297_v30, %v283_v29  ;;  %v382_v39 = vpop.f32.mrb[6].mxu0  ;;  %251 = vst [vmem:[%s560_s2 + $0x60] sm:$0xff] %v224_v35  ;;  %v390_v40 = vpop.f32.mrb[6].mxu1 }
  0xf4   :  { %246 = vst [vmem:[%s560_s2 + $0x38] sm:$0xff] %v382_v39  ;;  %v195_v41 = vpop.f32.mrb[7].mxu0  ;;  %254 = vst [vmem:[%s560_s2 + $0x78] sm:$0xff] %v390_v40  ;;  %v227_v42 = vpop.f32.mrb[7].mxu1  ;;  %v287_v49 = vmul.f32 %v382_v39, %v382_v39  ;;  %v292_v0 = vmul.f32 %v224_v35, %v224_v35  ;;  %v295_v9 = vmul.f32 %v390_v40, %v390_v40 }
  0xf5   :  { %v299_v43 = vadd.f32 %v298_v38, %v284_v37  ;;  %244 = vst [vmem:[%s560_s2 + $0x28] sm:$0xff] %v195_v41  ;;  %v260_v44 = vadd.f32 %v259_v36, %v195_v41  ;;  %v285_v45 = vmul.f32 %v195_v41, %v195_v41  ;;  %252 = vst [vmem:[%s560_s2 + $0x68] sm:$0xff] %v227_v42 }
  0xf6   :  { %v293_v5 = vmul.f32 %v227_v42, %v227_v42 }
  0xf7   :  { %v261_v47 = vadd.f32 %v381_v31, %v260_v44  ;;  %v300_v48 = vadd.f32 %v299_v43, %v285_v45 }
  0xf9   :  { %v301_v50 = vadd.f32 %v300_v48, %v286_v46  ;;  %v262_v51 = vadd.f32 %v382_v39, %v261_v47 }
  0xfb   :  { %v263_v53 = vadd.f32 %v262_v51, %v208_v18  ;;  %v302_v54 = vadd.f32 %v301_v50, %v287_v49 }
  0xfd   :  { %v303_v55 = vadd.f32 %v302_v54, %v288_v52  ;;  %v264_v56 = vadd.f32 %v263_v53, %v211_v22  ;;  %v255_v22 = vld [vmem:[%s558_s3] sm:$0x1] }
  0xff   :  { %v265_v59 = vadd.f32 %v385_v16, %v264_v56  ;;  %v304_v60 = vadd.f32 %v303_v55, %v289_v57 }
 0x101   :  { %v305_v62 = vadd.f32 %v304_v60, %v290_v58  ;;  %v266_v63 = vadd.f32 %v386_v20, %v265_v59 }
 0x103   :  { %v267_v1 = vadd.f32 %v266_v63, %v224_v35  ;;  %v306_v2 = vadd.f32 %v305_v62, %v291_v61 }
 0x105   :  { %v307_v3 = vadd.f32 %v306_v2, %v292_v0  ;;  %v268_v4 = vadd.f32 %v267_v1, %v227_v42 }
 0x107   :  { %v269_v7 = vadd.f32 %v389_v33, %v268_v4  ;;  %v308_v8 = vadd.f32 %v307_v3, %v293_v5 }
 0x109   :  { %v270_v10 = vadd.f32 %v390_v40, %v269_v7  ;;  %v309_v11 = vadd.f32 %v308_v8, %v294_v6 }
 0x10b   :  { %v271_v12 = vrot.slane %v270_v10, 4  ;;  %v310_v13 = vadd.f32 %v309_v11, %v295_v9 }
 0x10d   :  { %v272_v14 = vadd.f32 %v271_v12, %v270_v10  ;;  %v311_v15 = vrot.slane %v310_v13, 4 }
 0x10f   :  { %v273_v16 = vrot.slane %v272_v14, 2  ;;  %v312_v17 = vadd.f32 %v311_v15, %v310_v13 }
 0x111   :  { %v274_v18 = vadd.f32 %v273_v16, %v272_v14  ;;  %v313_v19 = vrot.slane %v312_v17, 2 }
 0x113   :  { %v275_v20 = vrot.slane %v274_v18, 1  ;;  %v314_v21 = vadd.f32 %v313_v19, %v312_v17 }
 0x115   :  { %v276_v23 = vadd.f32 %v275_v20, %v274_v18  ;;  %v315_v24 = vrot.slane %v314_v21, 1 }
 0x117   :  { %v277_v26 = vadd.f32 %v276_v23, %v255_v22  ;;  %v316_v27 = vadd.f32 %v315_v24, %v314_v21 }
 0x119   :  { %278 = vst [vmem:[%s558_s3] sm:$0x1] %v277_v26  ;;  %v317_v28 = vadd.f32 %v316_v27, %v279_v25 }
 0x11b   :  { %318 = vst [vmem:[%s559_s4] sm:$0x1] %v317_v28 }

</bundles_post_ra>
